<compile_context>
chip_gen: v6e
topology: v6e:2x2x1
jax: 0.10.0
libtpu: 0.0.40
codegen_flags: <defaults>
</compile_context>

<pallas_src>
import jax
import jax.numpy as jnp
from jax.experimental import pallas as pl
from jax.experimental.pallas import tpu as pltpu

_LANE = 128
_SUBLANE = 8


def _round_up(x, m):
    return (x + m - 1) // m * m


def actor_kernel(x_ref, w1_ref, b1_ref, w2_ref, b2_ref, w3_ref, b3_ref, means_ref):
    x = x_ref[...]

    # Layer 1: Linear(state_dim, 64) + tanh
    h1 = jnp.tanh(
        jnp.dot(x, w1_ref[...], preferred_element_type=jnp.float32) + b1_ref[...]
    )

    # Layer 2: Linear(64, 64) + tanh
    h2 = jnp.tanh(
        jnp.dot(h1, w2_ref[...], preferred_element_type=jnp.float32) + b2_ref[...]
    )

    # Layer 3: Linear(64, AP) -> means (lane-dense, AP = n_actions padded to 128)
    means_ref[...] = (
        jnp.dot(h2, w3_ref[...], preferred_element_type=jnp.float32) + b3_ref[...]
    )


def actor_forward(x, params, *, tile_b=512):
    """Run the Actor forward pass. Returns (means, stds) with shape [B, n_actions]."""
    w1, b1, w2, b2, w3, b3, logstds = params
    B, D = x.shape
    H = w1.shape[1]
    A = w3.shape[1]

    # --- lane-dense last layer: pad n_actions -> multiple of 128 columns -----------
    AP = _round_up(A, _LANE)
    if AP != A:
        w3p = jnp.zeros((H, AP), w3.dtype).at[:, :A].set(w3)
        b3p = jnp.zeros((1, AP), b3.dtype).at[:, :A].set(b3)
    else:
        w3p, b3p = w3, b3

    # --- batch tiling: TILE_B rows per grid step (multiple of 8), pad batch --------
    TILE_B = _round_up(min(tile_b, _round_up(B, _SUBLANE)), _SUBLANE)
    Bp = _round_up(B, TILE_B)
    xp = x if Bp == B else jnp.pad(x, ((0, Bp - B), (0, 0)))
    nb = Bp // TILE_B

    fixed = lambda i: (0, 0)  # weights/biases: same block every grid step (VMEM-resident)
    grid_spec = pltpu.PrefetchScalarGridSpec(
        num_scalar_prefetch=0,
        grid=(nb,),
        in_specs=[
            pl.BlockSpec((TILE_B, D), lambda i: (i, 0)),  # x tile (pipelined)
            pl.BlockSpec((D, H), fixed),                  # w1
            pl.BlockSpec((1, H), fixed),                  # b1
            pl.BlockSpec((H, H), fixed),                  # w2
            pl.BlockSpec((1, H), fixed),                  # b2
            pl.BlockSpec((H, AP), fixed),                 # w3 (padded)
            pl.BlockSpec((1, AP), fixed),                 # b3 (padded)
        ],
        out_specs=pl.BlockSpec((TILE_B, AP), lambda i: (i, 0)),
    )

    # VMEM budget: double-buffered x/means tiles + resident weights + activation headroom.
    tile_bytes = 4 * TILE_B * (D + AP + 2 * H)
    w_bytes = 4 * (D * H + H * H + H * AP + 2 * H + AP)
    vmem_limit = int(max(4 << 20, 4 * (2 * tile_bytes + 2 * w_bytes)))

    cost = pl.CostEstimate(
        flops=2 * B * (D * H + H * H + H * A),
        transcendentals=2 * H * B,                       # two tanh layers of width H
        bytes_accessed=4 * (B * D + B * A + D * H + H * H + H * A),
    )

    means_p = pl.pallas_call(
        actor_kernel,
        out_shape=jax.ShapeDtypeStruct((Bp, AP), jnp.float32),
        grid_spec=grid_spec,
        compiler_params=pltpu.CompilerParams(
            dimension_semantics=("parallel",),
            vmem_limit_bytes=vmem_limit,
        ),
        cost_estimate=cost,
    )(xp, w1, b1, w2, b2, w3p, b3p)

    means = means_p[:B, :A]
    # stds depends only on the [1, n_actions] logstds param: compute/broadcast outside
    # the kernel (no per-row HBM writeback).
    stds = jnp.broadcast_to(jnp.clip(jnp.exp(logstds), 0.001, 50.0), means.shape)
    # TODO(synk): for v6e/v7x throughput, cast x/weights to bf16 (keep f32 accumulation)
    # and loosen the means tolerance accordingly.
    return means, stds


def init_actor_params(key, state_dim, n_actions, hidden=64):
    """Deterministic init mimicking PyTorch nn.Linear default (U(-1/sqrt(fan_in), 1/sqrt(fan_in)))."""
    ks = jax.random.split(key, 6)

    def linear(kw, kb, fan_in, fan_out):
        bound = 1.0 / jnp.sqrt(fan_in)
        w = jax.random.uniform(kw, (fan_in, fan_out), jnp.float32, -bound, bound)
        b = jax.random.uniform(kb, (1, fan_out), jnp.float32, -bound, bound)
        return w, b

    w1, b1 = linear(ks[0], ks[1], state_dim, hidden)
    w2, b2 = linear(ks[2], ks[3], hidden, hidden)
    w3, b3 = linear(ks[4], ks[5], hidden, n_actions)
    logstds = jnp.full((1, n_actions), 0.1, dtype=jnp.float32)
    return (w1, b1, w2, b2, w3, b3, logstds)


def actor_ref(x, params):
    """Pure-JAX reference for correctness checking."""
    w1, b1, w2, b2, w3, b3, logstds = params
    h1 = jnp.tanh(x @ w1 + b1)
    h2 = jnp.tanh(h1 @ w2 + b2)
    means = h2 @ w3 + b3
    stds = jnp.clip(jnp.exp(logstds), 0.001, 50.0)
    return means, jnp.broadcast_to(stds, means.shape)


if __name__ == "__main__":
    key = jax.random.PRNGKey(0)
    kp, kx, kx2 = jax.random.split(key, 3)

    batch = 2
    state_dim = 32
    n_actions = 4

    params = init_actor_params(kp, state_dim, n_actions)

    # Small-batch check (single grid step, padded to 8 rows internally).
    x = jax.random.normal(kx, (batch, state_dim), jnp.float32)
    means, stds = actor_forward(x, params)
    jax.block_until_ready((means, stds))

    means_r, stds_r = actor_ref(x, params)
    assert means.shape == (batch, n_actions) and stds.shape == (batch, n_actions)
    assert jnp.allclose(means, means_r, atol=1e-5, rtol=1e-5)
    assert jnp.allclose(stds, stds_r, atol=1e-6, rtol=1e-6)

    # Larger, non-multiple batch: exercises the grid, batch padding, and pipelining.
    big_batch = 1037
    x_big = jax.random.normal(kx2, (big_batch, state_dim), jnp.float32)
    means_b, stds_b = actor_forward(x_big, params, tile_b=256)
    jax.block_until_ready((means_b, stds_b))
    means_br, stds_br = actor_ref(x_big, params)
    assert means_b.shape == (big_batch, n_actions)
    assert jnp.allclose(means_b, means_br, atol=1e-5, rtol=1e-5)
    assert jnp.allclose(stds_b, stds_br, atol=1e-6, rtol=1e-6)

    print("KERNEL_OK")
</pallas_src>

<mosaic_0001>
module attributes {stable_mosaic.version = 11 : i64} {
  func.func @actor_kernel(%arg0: i32, %arg1: memref<8x32xf32, #tpu.memory_space<vmem>>, %arg2: memref<32x64xf32, #tpu.memory_space<vmem>>, %arg3: memref<1x64xf32, #tpu.memory_space<vmem>>, %arg4: memref<64x64xf32, #tpu.memory_space<vmem>>, %arg5: memref<1x64xf32, #tpu.memory_space<vmem>>, %arg6: memref<64x128xf32, #tpu.memory_space<vmem>>, %arg7: memref<1x128xf32, #tpu.memory_space<vmem>>, %arg8: memref<8x128xf32, #tpu.memory_space<vmem>>) attributes {dimension_semantics = [#tpu.dimension_semantics<parallel>], iteration_bounds = array<i64: 1>, scalar_prefetch = 0 : i64, scratch_operands = 0 : i64, tpu.core_type = #tpu.core_type<tc>, window_params = [{transform_indices = @transform_0, window_bounds = array<i64: 8, 32>}, {pipeline_mode = #tpu.pipeline_mode<synchronous>, transform_indices = @transform_1, window_bounds = array<i64: 32, 64>}, {pipeline_mode = #tpu.pipeline_mode<synchronous>, transform_indices = @transform_2, window_bounds = array<i64: 1, 64>}, {pipeline_mode = #tpu.pipeline_mode<synchronous>, transform_indices = @transform_3, window_bounds = array<i64: 64, 64>}, {pipeline_mode = #tpu.pipeline_mode<synchronous>, transform_indices = @transform_4, window_bounds = array<i64: 1, 64>}, {pipeline_mode = #tpu.pipeline_mode<synchronous>, transform_indices = @transform_5, window_bounds = array<i64: 64, 128>}, {pipeline_mode = #tpu.pipeline_mode<synchronous>, transform_indices = @transform_6, window_bounds = array<i64: 1, 128>}, {transform_indices = @transform_7, window_bounds = array<i64: 8, 128>}]} {
    %c0 = arith.constant 0 : index
    %c0_0 = arith.constant 0 : index
    %0 = vector.load %arg1[%c0, %c0_0] : memref<8x32xf32, #tpu.memory_space<vmem>>, vector<8x32xf32>
    %c0_1 = arith.constant 0 : index
    %c0_2 = arith.constant 0 : index
    %1 = vector.load %arg2[%c0_1, %c0_2] : memref<32x64xf32, #tpu.memory_space<vmem>>, vector<32x64xf32>
    %cst = arith.constant dense<0.000000e+00> : vector<8x64xf32>
    %2 = tpu.matmul %0, %1, %cst {dimension_numbers = #tpu.dot_dimension_numbers<[1], [0], [0], [1], [0, 0, 1, 1], [], []>} : vector<8x32xf32>, vector<32x64xf32>, vector<8x64xf32> -> vector<8x64xf32>
    %c0_3 = arith.constant 0 : index
    %c0_4 = arith.constant 0 : index
    %3 = vector.load %arg3[%c0_3, %c0_4] : memref<1x64xf32, #tpu.memory_space<vmem>>, vector<1x64xf32>
    %4 = vector.broadcast %3 : vector<1x64xf32> to vector<8x64xf32>
    %5 = arith.addf %2, %4 : vector<8x64xf32>
    %6 = math.tanh %5 : vector<8x64xf32>
    %c0_5 = arith.constant 0 : index
    %c0_6 = arith.constant 0 : index
    %7 = vector.load %arg4[%c0_5, %c0_6] : memref<64x64xf32, #tpu.memory_space<vmem>>, vector<64x64xf32>
    %cst_7 = arith.constant dense<0.000000e+00> : vector<8x64xf32>
    %8 = tpu.matmul %6, %7, %cst_7 {dimension_numbers = #tpu.dot_dimension_numbers<[1], [0], [0], [1], [0, 0, 1, 1], [], []>} : vector<8x64xf32>, vector<64x64xf32>, vector<8x64xf32> -> vector<8x64xf32>
    %c0_8 = arith.constant 0 : index
    %c0_9 = arith.constant 0 : index
    %9 = vector.load %arg5[%c0_8, %c0_9] : memref<1x64xf32, #tpu.memory_space<vmem>>, vector<1x64xf32>
    %10 = vector.broadcast %9 : vector<1x64xf32> to vector<8x64xf32>
    %11 = arith.addf %8, %10 : vector<8x64xf32>
    %12 = math.tanh %11 : vector<8x64xf32>
    %c0_10 = arith.constant 0 : index
    %c0_11 = arith.constant 0 : index
    %13 = vector.load %arg6[%c0_10, %c0_11] : memref<64x128xf32, #tpu.memory_space<vmem>>, vector<64x128xf32>
    %cst_12 = arith.constant dense<0.000000e+00> : vector<8x128xf32>
    %14 = tpu.matmul %12, %13, %cst_12 {dimension_numbers = #tpu.dot_dimension_numbers<[1], [0], [0], [1], [0, 0, 1, 1], [], []>} : vector<8x64xf32>, vector<64x128xf32>, vector<8x128xf32> -> vector<8x128xf32>
    %c0_13 = arith.constant 0 : index
    %c0_14 = arith.constant 0 : index
    %15 = vector.load %arg7[%c0_13, %c0_14] : memref<1x128xf32, #tpu.memory_space<vmem>>, vector<1x128xf32>
    %16 = vector.broadcast %15 : vector<1x128xf32> to vector<8x128xf32>
    %17 = arith.addf %14, %16 : vector<8x128xf32>
    %c0_15 = arith.constant 0 : index
    %c0_16 = arith.constant 0 : index
    %18 = vector.load %arg8[%c0_15, %c0_16] : memref<8x128xf32, #tpu.memory_space<vmem>>, vector<8x128xf32>
    tpu.vector_store %arg8[%c0_15, %c0_16], %17 {strides = array<i32>} : memref<8x128xf32, #tpu.memory_space<vmem>>, vector<8x128xf32>,
    return
  }
  func.func @transform_0(%arg0: i32) -> (i32, i32) {
    %c0_i32 = arith.constant 0 : i32
    %c0_i32_0 = arith.constant 0 : i32
    return %arg0, %c0_i32 : i32, i32
  }
  func.func @transform_1(%arg0: i32) -> (i32, i32) {
    %c0_i32 = arith.constant 0 : i32
    %c0_i32_0 = arith.constant 0 : i32
    %c0_i32_1 = arith.constant 0 : i32
    return %c0_i32, %c0_i32_0 : i32, i32
  }
  func.func @transform_2(%arg0: i32) -> (i32, i32) {
    %c0_i32 = arith.constant 0 : i32
    %c0_i32_0 = arith.constant 0 : i32
    %c0_i32_1 = arith.constant 0 : i32
    return %c0_i32, %c0_i32_0 : i32, i32
  }
  func.func @transform_3(%arg0: i32) -> (i32, i32) {
    %c0_i32 = arith.constant 0 : i32
    %c0_i32_0 = arith.constant 0 : i32
    %c0_i32_1 = arith.constant 0 : i32
    return %c0_i32, %c0_i32_0 : i32, i32
  }
  func.func @transform_4(%arg0: i32) -> (i32, i32) {
    %c0_i32 = arith.constant 0 : i32
    %c0_i32_0 = arith.constant 0 : i32
    %c0_i32_1 = arith.constant 0 : i32
    return %c0_i32, %c0_i32_0 : i32, i32
  }
  func.func @transform_5(%arg0: i32) -> (i32, i32) {
    %c0_i32 = arith.constant 0 : i32
    %c0_i32_0 = arith.constant 0 : i32
    %c0_i32_1 = arith.constant 0 : i32
    return %c0_i32, %c0_i32_0 : i32, i32
  }
  func.func @transform_6(%arg0: i32) -> (i32, i32) {
    %c0_i32 = arith.constant 0 : i32
    %c0_i32_0 = arith.constant 0 : i32
    %c0_i32_1 = arith.constant 0 : i32
    return %c0_i32, %c0_i32_0 : i32, i32
  }
  func.func @transform_7(%arg0: i32) -> (i32, i32) {
    %c0_i32 = arith.constant 0 : i32
    %c0_i32_0 = arith.constant 0 : i32
    return %arg0, %c0_i32 : i32, i32
  }
}

</mosaic_0001>

<bundles_post_ra>
// kernel: tpu_custom_call.1
= control target key start
LH: loop header
LB: loop body
LE: loop exit
PB: predicated region body
PF: predicated region fallthrough
CT: control target
= control target key end

     0   :  { %12 = vsyncpa [#allocation3], 0  ;;  %s672_s0 = inlined_call_operand.hbm [shape: f32[8,32], index: 0, kind: input, shape index: {}]   ;;  %s673_s1 = inlined_call_operand.hbm [shape: f32[32,64], index: 1, kind: input, shape index: {}]   ;;  %s674_s2 = inlined_call_operand.vmem [shape: f32[1,64], index: 2, kind: input, shape index: {}]   ;;  %s675_s3 = inlined_call_operand.hbm [shape: f32[64,64], index: 3, kind: input, shape index: {}]   ;;  %s676_s4 = inlined_call_operand.vmem [shape: f32[1,64], index: 4, kind: input, shape index: {}]   ;;  %s677_s5 = inlined_call_operand.hbm [shape: f32[64,128], index: 5, kind: input, shape index: {}]   ;;  %s678_s6 = inlined_call_operand.vmem [shape: f32[1,128], index: 6, kind: input, shape index: {}]   ;;  %s679_s7 = inlined_call_operand.hbm [shape: f32[8,128], index: 7, kind: output, shape index: {}]  }
   0x1   :  { %13 = vsyncpa [#allocation6], 0 }
   0x2   :  { %14 = vsyncpa [#allocation9], 0 }
   0x3   :  { %15 = vsyncpa [#allocation4], 0  ;;  %s562_s24 = smov [#allocation5]  }
   0x4   :  { %s31_s25 = sshll.u32 %s562_s24, 4  ;;  %s32_s25 = int_to_ptr.vmem [resolvable:$true] %s31_s25 }
   0x5   :  { %s462_s26 = scalar_lea.vmem %s32_s25, 512  ;;  %p467_p1 = scmp.lt.s32.totalorder %s32_s25, %s32_s25 }
   0x6   :  { %p463_p0 = scmp.ne.s32.totalorder %s32_s25, %s462_s26  ;;  %p468_p2 = scmp.lt.s32.totalorder %s462_s26, %s462_s26 }
   0x8   :  { %p469_p3 = por %p468_p2, %p467_p1 }
   0xa   :  { %p470_p4 = pnand %p469_p3, %p463_p0 }
   0xc   :  { %473 = shalt.err (!%p470_p4)
}
   0xd   :  { %s563_s27 = smov 128   ;;  %s564_s28 = smov 8  }
   0xe   :  { %37 = dma.hbm_to_vmem [thread:$0]  %s673_s1, 512, %s32_s25, [#allocation6], %s563_s27, %s563_s27, %s564_s28  }
   0xf   :  { %s565_s8 = smov [#allocation2]   ;;  %s566_s10 = smov [#allocation7]  }
  0x10   :  { %s22_s9 = sshll.u32 %s565_s8, 4  ;;  %s45_s11 = sshll.u32 %s566_s10, 4  ;;  %s23_s9 = int_to_ptr.vmem [resolvable:$true] %s22_s9  ;;  %s46_s11 = int_to_ptr.vmem [resolvable:$true] %s45_s11 }
  0x11   :  { %s482_s12 = scalar_lea.vmem %s23_s9, 128  ;;  %p487_p6 = scmp.lt.s32.totalorder %s23_s9, %s23_s9 }
  0x12   :  { %p483_p5 = scmp.ne.s32.totalorder %s23_s9, %s482_s12  ;;  %p488_p7 = scmp.lt.s32.totalorder %s482_s12, %s482_s12 }
  0x14   :  { %p489_p8 = por %p488_p7, %p487_p6 }
  0x16   :  { %p490_p9 = pnand %p489_p8, %p483_p5 }
  0x18   :  { %493 = shalt.err (!%p490_p9)
}
  0x19   :  { %25 = dma.hbm_to_vmem [thread:$0]  %s672_s0, 128, %s23_s9, [#allocation3]  }
  0x1a   :  { %s502_s15 = scalar_lea.vmem %s46_s11, 1024  ;;  %p507_p11 = scmp.lt.s32.totalorder %s46_s11, %s46_s11 }
  0x1b   :  { %p503_p10 = scmp.ne.s32.totalorder %s46_s11, %s502_s15  ;;  %p508_p12 = scmp.lt.s32.totalorder %s502_s15, %s502_s15 }
  0x1d   :  { %p509_p13 = por %p508_p12, %p507_p11 }
  0x1f   :  { %p510_p0 = pnand %p509_p13, %p503_p10 }
  0x21   :  { %513 = shalt.err (!%p510_p0)
}
  0x22   :  { %51 = dma.hbm_to_vmem [thread:$0]  %s675_s3, 1024, %s46_s11, [#allocation6], %s563_s27, %s563_s27, %s564_s28  }
  0x23   :  { %s567_s17 = smov [#allocation8]  }
  0x24   :  { %s59_s18 = sshll.u32 %s567_s17, 4  ;;  %s60_s18 = int_to_ptr.vmem [resolvable:$true] %s59_s18 }
  0x25   :  { %s522_s19 = scalar_lea.vmem %s60_s18, 1024  ;;  %p527_p2 = scmp.lt.s32.totalorder %s60_s18, %s60_s18 }
  0x26   :  { %p523_p1 = scmp.ne.s32.totalorder %s60_s18, %s522_s19  ;;  %p528_p3 = scmp.lt.s32.totalorder %s522_s19, %s522_s19 }
  0x28   :  { %p529_p4 = por %p528_p3, %p527_p2 }
  0x2a   :  { %p530_p5 = pnand %p529_p4, %p523_p1 }
  0x2c   :  { %533 = shalt.err (!%p530_p5)
}
  0x2d   :  { %65 = dma.hbm_to_vmem [thread:$0]  %s677_s5, 1024, %s60_s18, [#allocation9], %s563_s27, %s563_s27, %s564_s28  }
  0x2e   :  { %554 = dma.done.wait [#allocation3], 128  }
  0x2f   :  { %555 = vsyncadd [#allocation3], 4294967168 }
  0x30   :  { %556 = dma.done.wait [#allocation6], 1536  }
  0x31   :  { %557 = vsyncadd [#allocation6], 4294965760 }
  0x32   :  { %558 = dma.done.wait [#allocation9], 1024  }
  0x33   :  { %559 = vsyncadd [#allocation9], 4294966272  ;;  %v568_v0 = vmov 0.0   ;;  %vm569_vm0 = vmmov 0   ;;  %v84_v1 = vld [vmem:[#allocation5 + $0x18] sm:$0xff]  ;;  %v83_v2 = vld [vmem:[#allocation5 + $0x10] sm:$0xff] }
  0x34   :  { %392 = vmatprep.subr.mxu0 %v568_v0  ;;  %400 = vmatprep.mubr.msk.f32.mxu0 %vm569_vm0, %v568_v0  ;;  %v82_v3 = vld [vmem:[#allocation5 + $0x8] sm:$0xff]  ;;  %v81_v4 = vld [vmem:[#allocation5] sm:$0xff]  ;;  %v80_v5 = vld [vmem:[#allocation2] sm:$0xff]  ;;  %vm92_vm1 = vcmask 261120   ;;  %vm182_vm2 = vcmask 523264   ;;  %s570_s24 = smov [#allocation10]  }
  0x35   :  { %403 = vmatprep.subr.mxu1 %v568_v0  ;;  %419 = vmatprep.mubr.msk.f32.mxu1 %vm569_vm0, %v568_v0  ;;  %v174_v6 = vld [vmem:[#allocation7 + $0x38] sm:$0xff]  ;;  %v173_v7 = vld [vmem:[#allocation7 + $0x30] sm:$0xff]  ;;  %v172_v8 = vld [vmem:[#allocation7 + $0x28] sm:$0xff]  ;;  %s352_s25 = sshll.u32 %s570_s24, 4  ;;  %s353_s25 = int_to_ptr.vmem [resolvable:$true] %s352_s25 }
  0x36   :  { %393 = vmatpush3.msra.mxu0 %v84_v1  ;;  %404 = vmatpush3.msra.mxu1 %v174_v6  ;;  %v171_v9 = vld [vmem:[#allocation7 + $0x20] sm:$0xff]  ;;  %v170_v10 = vld [vmem:[#allocation7 + $0x18] sm:$0xff]  ;;  %v169_v11 = vld [vmem:[#allocation7 + $0x10] sm:$0xff]  ;;  %s534_s26 = scalar_lea.vmem %s353_s25, 128  ;;  %p539_p7 = scmp.lt.s32.totalorder %s353_s25, %s353_s25 }
  0x37   :  { %394 = vmatprep.subr.mxu0 %v568_v0  ;;  %405 = vmatprep.subr.mxu1 %v568_v0  ;;  %v168_v12 = vld [vmem:[#allocation7 + $0x8] sm:$0xff]  ;;  %v167_v13 = vld [vmem:[#allocation7] sm:$0xff]  ;;  %v363_v14 = vld [vmem:[%s674_s2] ss:$0 sm:$0xff]  ;;  %p535_p6 = scmp.ne.s32.totalorder %s353_s25, %s534_s26  ;;  %p540_p8 = scmp.lt.s32.totalorder %s534_s26, %s534_s26 }
  0x38   :  { %395 = vmatpush3.msra.mxu0 %v83_v2  ;;  %406 = vmatpush3.msra.mxu1 %v173_v7  ;;  %v264_v19 = vld [vmem:[#allocation8 + $0x38] sm:$0xff]  ;;  %v263_v20 = vld [vmem:[#allocation8 + $0x30] sm:$0xff]  ;;  %v262_v21 = vld [vmem:[#allocation8 + $0x28] sm:$0xff] }
  0x39   :  { %396 = vmatprep.subr.mxu0 %v568_v0  ;;  %407 = vmatprep.subr.mxu1 %v568_v0  ;;  %v261_v22 = vld [vmem:[#allocation8 + $0x20] sm:$0xff]  ;;  %v260_v23 = vld [vmem:[#allocation8 + $0x18] sm:$0xff]  ;;  %v259_v24 = vld [vmem:[#allocation8 + $0x10] sm:$0xff]  ;;  %p541_p9 = por %p540_p8, %p539_p7 }
  0x3a   :  { %397 = vmatpush3.msra.mxu0 %v82_v3  ;;  %408 = vmatpush3.msra.mxu1 %v172_v8  ;;  %v258_v25 = vld [vmem:[#allocation8 + $0x8] sm:$0xff]  ;;  %v257_v26 = vld [vmem:[#allocation8] sm:$0xff]  ;;  %v365_v27 = vld [vmem:[%s676_s4] ss:$0 sm:$0xff] }
  0x3b   :  { %398 = vmatprep.subr.mxu0 %v568_v0  ;;  %409 = vmatprep.subr.mxu1 %v568_v0  ;;  %v367_v32 = vld [vmem:[%s678_s6] ss:$0 sm:$0xff]  ;;  %p542_p10 = pnand %p541_p9, %p535_p6 }
  0x3c   :  { %399 = vmatpush3.msra.mxu0 %v81_v4  ;;  %410 = vmatpush3.msra.mxu1 %v171_v9 }
  0x3d   :  { %401 = vmatmul.mubr.msk.f32.vlgmr.msra.gmra.mxu0 %vm92_vm1, %v80_v5  ;;  %422 = vmatprep.subr.mxu0 %v568_v0 }
  0x3e   :  { %438 = vmatprep.mubr.msk.f32.mxu0 %vm569_vm0, %v568_v0  ;;  %411 = vmatprep.subr.mxu1 %v568_v0 }
  0x3f   :  { %412 = vmatpush3.msra.mxu1 %v170_v10  ;;  %423 = vmatpush3.msra.mxu0 %v264_v19 }
  0x40   :  { %413 = vmatprep.subr.mxu1 %v568_v0  ;;  %424 = vmatprep.subr.mxu0 %v568_v0 }
  0x41   :  { %414 = vmatpush3.msra.mxu1 %v169_v11  ;;  %425 = vmatpush3.msra.mxu0 %v263_v20 }
  0x42   :  { %415 = vmatprep.subr.mxu1 %v568_v0  ;;  %426 = vmatprep.subr.mxu0 %v568_v0 }
  0x43   :  { %416 = vmatpush3.msra.mxu1 %v168_v12  ;;  %427 = vmatpush3.msra.mxu0 %v262_v21 }
  0x44   :  { %417 = vmatprep.subr.mxu1 %v568_v0  ;;  %428 = vmatprep.subr.mxu0 %v568_v0 }
  0x45   :  { %418 = vmatpush3.msra.mxu1 %v167_v13  ;;  %429 = vmatpush3.msra.mxu0 %v261_v22 }
  0x46   :  { %430 = vmatprep.subr.mxu0 %v568_v0 }
  0x47   :  { %431 = vmatpush3.msra.mxu0 %v260_v23 }
  0x48   :  { %432 = vmatprep.subr.mxu0 %v568_v0 }
  0x49   :  { %433 = vmatpush3.msra.mxu0 %v259_v24 }
  0x4a   :  { %434 = vmatprep.subr.mxu0 %v568_v0 }
  0x4b   :  { %435 = vmatpush3.msra.mxu0 %v258_v25 }
  0x4c   :  { %436 = vmatprep.subr.mxu0 %v568_v0 }
  0x4d   :  { %437 = vmatpush3.msra.mxu0 %v257_v26 }
  0xfd   :  { %v162_v15 = vpop.f32.mrf.mxu0 }
  0xfe   :  { %v163_v16 = vadd.f32 %v363_v14, %v162_v15 }
  0xff   :  { %v402_v17 = vpop.f32.mrf.mxu0 }
 0x100   :  { %450 = vtanh.f32 %v163_v16 }
 0x10d   :  { %v451_v18 = vpop.eup %450 }
 0x10e   :  { %420 = vmatmul.mubr.msk.f32.vlgmr.msra.gmra.mxu1 %vm182_vm2, %v451_v18 }
 0x1ce   :  { %v252_v28 = vpop.f32.mrf.mxu1 }
 0x1cf   :  { %v253_v29 = vadd.f32 %v365_v27, %v252_v28 }
 0x1d0   :  { %v421_v30 = vpop.f32.mrf.mxu1 }
 0x1d1   :  { %452 = vtanh.f32 %v253_v29 }
 0x1de   :  { %v453_v31 = vpop.eup %452 }
 0x1df   :  { %439 = vmatmul.mubr.msk.f32.vlgmr.msra.gmra.mxu0 %vm182_vm2, %v453_v31 }
 0x29f   :  { %v341_v33 = vpop.f32.mrf.mxu0 }
 0x2a0   :  { %v342_v34 = vadd.f32 %v367_v32, %v341_v33 }
 0x2a1   :  { %v440_v35 = vpop.f32.mrf.mxu0 }
 0x2a2   :  { %345 = vst [vmem:[#allocation10] sm:$0xff] %v342_v34 }
 0x2a3   :  { %545 = shalt.err (!%p542_p10)
}
 0x2a4   :  { %355 = dma.vmem_to_hbm [thread:$0]  %s353_s25, 128, %s679_s7, [#allocation4]  }
 0x2a5   :  { %560 = dma.done.wait [#allocation4], 128  }
 0x2a6   :  { %561 = vsyncadd [#allocation4], 4294967168 }
 0x2a7   :  { %359 = vsyncpa [#allocation3], 1 }
 0x2a8   :  { %360 = vsyncpa [#allocation6], 1 }
 0x2a9   :  { %361 = vsyncpa [#allocation9], 1 }
 0x2aa   :  { %362 = vsyncpa [#allocation4], 1 }

</bundles_post_ra>
